<compile_context>
chip_gen: v7x
topology: tpu7x:2x2x1
jax: 0.10.0
libtpu: 0.0.40
codegen_flags: <defaults>
</compile_context>

<pallas_src>
import functools

import jax
import jax.numpy as jnp
from jax.experimental import pallas as pl
from jax.experimental.pallas import tpu as pltpu


def grouped_conv3x3_kernel(x_ref, w_ref, b_ref, o_ref):
    # x_ref: (N, K=9*Cin, H*W) im2col patches for one group, all batches
    # w_ref: (Cout, K)          this group's flattened 3x3 kernel
    # b_ref: (Cout, 1)
    # o_ref: (N, Cout, H*W)     lane-dense output (last dim = H*W)
    w = w_ref[...]
    b = b_ref[...]
    n_batch = o_ref.shape[0]
    for n in range(n_batch):  # static unroll; N is small
        acc = jnp.dot(w, x_ref[n], preferred_element_type=jnp.float32)  # (Cout, HW)
        acc = acc + b
        # LeakyReLU (PyTorch default negative_slope = 0.01)
        acc = jnp.where(acc >= 0, acc, 0.01 * acc)
        o_ref[n] = acc.astype(o_ref.dtype)


def conv_layer_forward(x, weight, bias, n_file):
    """Forward of conv_layer (eval mode): grouped 3x3 conv, pad=1 + LeakyReLU.

    x:      (N, n_file*Cin, H, W)     NCHW, like the PyTorch module
    weight: (n_file*Cout, Cin, 3, 3)  PyTorch grouped-conv weight layout
    bias:   (n_file*Cout,)
    """
    N, C, H, W = x.shape
    G = n_file
    assert C % G == 0 and weight.shape[0] % G == 0
    Cin = C // G
    Cout = weight.shape[0] // G
    K = 9 * Cin
    HW = H * W

    # NCHW -> (N, G, Cin, H, W) is a pure reshape; zero-pad spatial dims by 1.
    xg = x.reshape(N, G, Cin, H, W)
    x_pad = jnp.pad(xg, ((0, 0), (0, 0), (0, 0), (1, 1), (1, 1)))

    # im2col in the wrapper (XLA fuses this cheaply at these sizes).
    # K ordering is (cin, dy, dx), matching the weight reshape below.
    patches = jnp.stack(
        [x_pad[..., dy:dy + H, dx:dx + W] for dy in range(3) for dx in range(3)],
        axis=3)                               # (N, G, Cin, 9, H, W)
    patches = patches.reshape(N, G, K, HW)    # (N, G, 9*Cin, H*W)

    # (G*Cout, Cin, 3, 3) -> (G, Cout, 9*Cin); K order (cin, ky, kx) matches.
    wg = weight.reshape(G, Cout, K)
    bg = bias.reshape(G, Cout, 1)

    out = pl.pallas_call(
        grouped_conv3x3_kernel,
        out_shape=jax.ShapeDtypeStruct((N, G, Cout, HW), x.dtype),
        grid=(G,),
        in_specs=[
            pl.BlockSpec((N, None, K, HW), lambda g: (0, g, 0, 0)),
            pl.BlockSpec((None, Cout, K), lambda g: (g, 0, 0)),
            pl.BlockSpec((None, Cout, 1), lambda g: (g, 0, 0)),
        ],
        out_specs=pl.BlockSpec((N, None, Cout, HW), lambda g: (0, g, 0, 0)),
        compiler_params=pltpu.CompilerParams(
            dimension_semantics=("parallel",)),
    )(patches, wg, bg)

    # (N, G, Cout, H*W) -> (N, G*Cout, H, W): pure reshape, no transpose.
    return out.reshape(N, G * Cout, H, W)


def _reference(x, weight, bias, n_file):
    y = jax.lax.conv_general_dilated(
        x, weight,
        window_strides=(1, 1),
        padding=((1, 1), (1, 1)),
        feature_group_count=n_file,
        dimension_numbers=("NCHW", "OIHW", "NCHW"),
    )
    y = y + bias[None, :, None, None]
    return jnp.where(y >= 0, y, 0.01 * y)


if __name__ == "__main__":
    # Module config: in_channels=4, out_channels=4, n_file=2
    in_channels, out_channels, n_file = 4, 4, 2
    N, H, W = 2, 16, 16

    key = jax.random.PRNGKey(0)
    kx, kw, kb = jax.random.split(key, 3)

    x = jax.random.normal(kx, (N, in_channels * n_file, H, W), jnp.float32)
    # Conv2d weight shape for groups=n_file: (out_ch*n_file, in_ch, 3, 3)
    weight = 0.1 * jax.random.normal(
        kw, (out_channels * n_file, in_channels, 3, 3), jnp.float32)
    bias = 0.1 * jax.random.normal(kb, (out_channels * n_file,), jnp.float32)

    fwd = jax.jit(functools.partial(conv_layer_forward, n_file=n_file))
    y = fwd(x, weight, bias)
    jax.block_until_ready(y)

    y_ref = _reference(x, weight, bias, n_file)
    assert y.shape == (N, out_channels * n_file, H, W)
    assert jnp.allclose(y, y_ref, atol=1e-4, rtol=1e-4), "mismatch vs XLA reference"

    print("KERNEL_OK")
</pallas_src>

<mosaic_0001>
module attributes {stable_mosaic.version = 11 : i64} {
  func.func @grouped_conv3x3_kernel(%arg0: i32, %arg1: memref<2x1x36x256xf32, #tpu.memory_space<vmem>>, %arg2: memref<1x4x36xf32, #tpu.memory_space<vmem>>, %arg3: memref<1x4x1xf32, #tpu.memory_space<vmem>>, %arg4: memref<2x1x4x256xf32, #tpu.memory_space<vmem>>) attributes {dimension_semantics = [#tpu.dimension_semantics<parallel>], iteration_bounds = array<i64: 2>, scalar_prefetch = 0 : i64, scratch_operands = 0 : i64, tpu.core_type = #tpu.core_type<tc>, window_params = [{transform_indices = @transform_0, window_bounds = array<i64: 2, 1, 36, 256>}, {transform_indices = @transform_1, window_bounds = array<i64: 1, 4, 36>}, {transform_indices = @transform_2, window_bounds = array<i64: 1, 4, 1>}, {transform_indices = @transform_3, window_bounds = array<i64: 2, 1, 4, 256>}]} {
    %c0 = arith.constant 0 : index
    %c0_0 = arith.constant 0 : index
    %c0_1 = arith.constant 0 : index
    %0 = vector.load %arg2[%c0, %c0_0, %c0_1] : memref<1x4x36xf32, #tpu.memory_space<vmem>>, vector<1x4x36xf32>
    %1 = vector.shape_cast %0 : vector<1x4x36xf32> to vector<4x36xf32>
    %c0_2 = arith.constant 0 : index
    %c0_3 = arith.constant 0 : index
    %c0_4 = arith.constant 0 : index
    %2 = vector.load %arg3[%c0_2, %c0_3, %c0_4] : memref<1x4x1xf32, #tpu.memory_space<vmem>>, vector<1x4x1xf32>
    %3 = vector.shape_cast %2 : vector<1x4x1xf32> to vector<4x1xf32>
    %c0_5 = arith.constant 0 : index
    %c0_6 = arith.constant 0 : index
    %c0_7 = arith.constant 0 : index
    %c0_8 = arith.constant 0 : index
    %4 = vector.load %arg1[%c0_5, %c0_6, %c0_7, %c0_8] : memref<2x1x36x256xf32, #tpu.memory_space<vmem>>, vector<1x1x36x256xf32>
    %5 = vector.shape_cast %4 : vector<1x1x36x256xf32> to vector<36x256xf32>
    %cst = arith.constant dense<0.000000e+00> : vector<4x256xf32>
    %6 = tpu.matmul %1, %5, %cst {dimension_numbers = #tpu.dot_dimension_numbers<[1], [0], [0], [1], [0, 0, 1, 1], [], []>} : vector<4x36xf32>, vector<36x256xf32>, vector<4x256xf32> -> vector<4x256xf32>
    %7 = vector.broadcast %3 : vector<4x1xf32> to vector<4x256xf32>
    %8 = arith.addf %6, %7 : vector<4x256xf32>
    %cst_9 = arith.constant 0.000000e+00 : f32
    %9 = vector.broadcast %cst_9 : f32 to vector<4x256xf32>
    %10 = arith.cmpf oge, %8, %9 : vector<4x256xf32>
    %cst_10 = arith.constant 0.00999999977 : f32
    %11 = vector.broadcast %cst_10 : f32 to vector<4x256xf32>
    %12 = arith.mulf %11, %8 : vector<4x256xf32>
    %13 = arith.select %10, %8, %12 : vector<4x256xi1>, vector<4x256xf32>
    %c0_11 = arith.constant 0 : index
    %c0_12 = arith.constant 0 : index
    %c0_13 = arith.constant 0 : index
    %c0_14 = arith.constant 0 : index
    %14 = vector.load %arg4[%c0_11, %c0_12, %c0_13, %c0_14] : memref<2x1x4x256xf32, #tpu.memory_space<vmem>>, vector<1x1x4x256xf32>
    %15 = vector.shape_cast %14 : vector<1x1x4x256xf32> to vector<4x256xf32>
    %16 = vector.shape_cast %13 : vector<4x256xf32> to vector<1x1x4x256xf32>
    tpu.vector_store %arg4[%c0_11, %c0_12, %c0_13, %c0_14], %16 {strides = array<i32>} : memref<2x1x4x256xf32, #tpu.memory_space<vmem>>, vector<1x1x4x256xf32>,
    %c1 = arith.constant 1 : index
    %c0_15 = arith.constant 0 : index
    %c0_16 = arith.constant 0 : index
    %c0_17 = arith.constant 0 : index
    %17 = vector.load %arg1[%c1, %c0_15, %c0_16, %c0_17] : memref<2x1x36x256xf32, #tpu.memory_space<vmem>>, vector<1x1x36x256xf32>
    %18 = vector.shape_cast %17 : vector<1x1x36x256xf32> to vector<36x256xf32>
    %cst_18 = arith.constant dense<0.000000e+00> : vector<4x256xf32>
    %19 = tpu.matmul %1, %18, %cst_18 {dimension_numbers = #tpu.dot_dimension_numbers<[1], [0], [0], [1], [0, 0, 1, 1], [], []>} : vector<4x36xf32>, vector<36x256xf32>, vector<4x256xf32> -> vector<4x256xf32>
    %20 = vector.broadcast %3 : vector<4x1xf32> to vector<4x256xf32>
    %21 = arith.addf %19, %20 : vector<4x256xf32>
    %cst_19 = arith.constant 0.000000e+00 : f32
    %22 = vector.broadcast %cst_19 : f32 to vector<4x256xf32>
    %23 = arith.cmpf oge, %21, %22 : vector<4x256xf32>
    %cst_20 = arith.constant 0.00999999977 : f32
    %24 = vector.broadcast %cst_20 : f32 to vector<4x256xf32>
    %25 = arith.mulf %24, %21 : vector<4x256xf32>
    %26 = arith.select %23, %21, %25 : vector<4x256xi1>, vector<4x256xf32>
    %c1_21 = arith.constant 1 : index
    %c0_22 = arith.constant 0 : index
    %c0_23 = arith.constant 0 : index
    %c0_24 = arith.constant 0 : index
    %27 = vector.load %arg4[%c1_21, %c0_22, %c0_23, %c0_24] : memref<2x1x4x256xf32, #tpu.memory_space<vmem>>, vector<1x1x4x256xf32>
    %28 = vector.shape_cast %27 : vector<1x1x4x256xf32> to vector<4x256xf32>
    %29 = vector.shape_cast %26 : vector<4x256xf32> to vector<1x1x4x256xf32>
    tpu.vector_store %arg4[%c1_21, %c0_22, %c0_23, %c0_24], %29 {strides = array<i32>} : memref<2x1x4x256xf32, #tpu.memory_space<vmem>>, vector<1x1x4x256xf32>,
    return
  }
  func.func @transform_0(%arg0: i32) -> (i32, i32, i32, i32) {
    %c0_i32 = arith.constant 0 : i32
    %c0_i32_0 = arith.constant 0 : i32
    %c0_i32_1 = arith.constant 0 : i32
    %c0_i32_2 = arith.constant 0 : i32
    return %c0_i32, %arg0, %c0_i32_0, %c0_i32_1 : i32, i32, i32, i32
  }
  func.func @transform_1(%arg0: i32) -> (i32, i32, i32) {
    %c0_i32 = arith.constant 0 : i32
    %c0_i32_0 = arith.constant 0 : i32
    %c0_i32_1 = arith.constant 0 : i32
    return %arg0, %c0_i32, %c0_i32_0 : i32, i32, i32
  }
  func.func @transform_2(%arg0: i32) -> (i32, i32, i32) {
    %c0_i32 = arith.constant 0 : i32
    %c0_i32_0 = arith.constant 0 : i32
    %c0_i32_1 = arith.constant 0 : i32
    return %arg0, %c0_i32, %c0_i32_0 : i32, i32, i32
  }
  func.func @transform_3(%arg0: i32) -> (i32, i32, i32, i32) {
    %c0_i32 = arith.constant 0 : i32
    %c0_i32_0 = arith.constant 0 : i32
    %c0_i32_1 = arith.constant 0 : i32
    %c0_i32_2 = arith.constant 0 : i32
    return %c0_i32, %arg0, %c0_i32_0, %c0_i32_1 : i32, i32, i32, i32
  }
}

</mosaic_0001>

<bundles_post_ra>
// kernel: conv_layer_forward.1
= control target key start
LH: loop header
LB: loop body
LE: loop exit
PB: predicated region body
PF: predicated region fallthrough
CT: control target
= control target key end

     0   :  { %s717_s12 = smov 0   ;;  %s719_s13 = smov 0   ;;  %s858_s0 = inlined_call_operand.vmem [shape: f32[2,2,36,256], index: 0, kind: input, shape index: {}]   ;;  %s859_s1 = inlined_call_operand.vmem [shape: f32[2,4,36], index: 1, kind: input, shape index: {}]   ;;  %s860_s2 = inlined_call_operand.vmem [shape: f32[2,4,1], index: 2, kind: input, shape index: {}]   ;;  %s861_s3 = inlined_call_operand.vmem [shape: f32[2,2,4,256], index: 3, kind: output, shape index: {}]  }
   0x1   :  { %s721_s14 = smov 0  }
   0x2 LB: > { %s733_s15 = sadd.s32 4294967295, %s693_s14   ;;  %s736_s16 = sadd.s32 1, %s693_s14   ;;  %s693_s14 = sphi %s721_s14, %s865_s14   ;;  %s689_s13 = sphi %s719_s13, %s864_s13   ;;  %s685_s12 = sphi %s717_s12, %s863_s12  }
   0x3   : > { %s17_s17 = ssub.s32 %s693_s14, %s736_s16  ;;  %s20_s18 = sadd.s32 1, %s689_s13 }
   0x4   : > { %p18_p0 = scmp.eq.s32.totalorder %s17_s17, 0  ;;  %p27_p1 = scmp.ne.s32.totalorder %s689_s13, %s685_s12 }
   0x5   : > { %p28_p2 = scmp.eq.s32.totalorder %s693_s14, 0  ;;  %p109_p3 = scmp.eq.s32.totalorder %s733_s15, 1 }
   0x6   : > { %s746_s19 = scalar_select %p18_p0, %s689_s13, %s20_s18  }
   0x7   : > { %p29_p4 = por %p28_p2, %p27_p1  ;;  %p748_p5 = por %p109_p3, %p27_p1 }
   0x8   : > { %p596_p6 = scmp.ge.s32.totalorder %s693_s14, 2 }
   0xa   : > { %131 = sbr.rel (%p596_p6) target bundleno = 32 (0x20), region = 16 }
  0x11   : > { %134 = sbr.rel (!%p29_p4) target bundleno = 32 (0x20), region = 20  ;;  %s136_s21 = sand.u32 (%p29_p4), 1, %s689_s13  }
  0x12   : > { %s642_s22 = smul.u32 (%p29_p4), 80, %s693_s14 }
  0x13   : > { %s641_s23 = smul.u32 (%p29_p4), 160, %s136_s21 }
  0x14   : > { %s758_s26 = scalar_lea.vmem (%p29_p4), %s858_s0, %s642_s22 }
  0x15   : > { %v154_v0 = vld [vmem:[%s758_s26] sm:$0xff] (%p29_p4)  ;;  %v156_v1 = vld [vmem:[%s758_s26 + $0x8] sm:$0xff] (%p29_p4)  ;;  %v158_v2 = vld [vmem:[%s758_s26 + $0x10] sm:$0xff] (%p29_p4)  ;;  %s763_s27 = scalar_lea.vmem (%p29_p4), [#allocation2], %s641_s23 }
  0x16   : > { %155 = vst [vmem:[%s763_s27] sm:$0xff] (%p29_p4), %v154_v0  ;;  %157 = vst [vmem:[%s763_s27 + $0x8] sm:$0xff] (%p29_p4), %v156_v1  ;;  %v160_v3 = vld [vmem:[%s758_s26 + $0x18] sm:$0xff] (%p29_p4)  ;;  %v162_v4 = vld [vmem:[%s758_s26 + $0x20] sm:$0xff] (%p29_p4) }
  0x17   : > { %159 = vst [vmem:[%s763_s27 + $0x10] sm:$0xff] (%p29_p4), %v158_v2  ;;  %v164_v5 = vld [vmem:[%s758_s26 + $0x28] sm:$0xff] (%p29_p4)  ;;  %161 = vst [vmem:[%s763_s27 + $0x18] sm:$0xff] (%p29_p4), %v160_v3  ;;  %v166_v6 = vld [vmem:[%s758_s26 + $0x30] sm:$0xff] (%p29_p4) }
  0x18   : > { %163 = vst [vmem:[%s763_s27 + $0x20] sm:$0xff] %v162_v4  ;;  %165 = vst [vmem:[%s763_s27 + $0x28] sm:$0xff] %v164_v5  ;;  %v168_v7 = vld [vmem:[%s758_s26 + $0x38] sm:$0xff]  ;;  %v170_v8 = vld [vmem:[%s758_s26 + $0x40] sm:$0xff] }
  0x19   : > { %167 = vst [vmem:[%s763_s27 + $0x30] sm:$0xff] %v166_v6  ;;  %169 = vst [vmem:[%s763_s27 + $0x38] sm:$0xff] %v168_v7  ;;  %v172_v9 = vld [vmem:[%s758_s26 + $0x48] sm:$0xff]  ;;  %v174_v10 = vld [vmem:[%s758_s26 + $0xa0] sm:$0xff] }
  0x1a   : > { %171 = vst [vmem:[%s763_s27 + $0x40] sm:$0xff] %v170_v8  ;;  %v176_v11 = vld [vmem:[%s758_s26 + $0xa8] sm:$0xff]  ;;  %173 = vst [vmem:[%s763_s27 + $0x48] sm:$0xff] %v172_v9  ;;  %v178_v12 = vld [vmem:[%s758_s26 + $0xb0] sm:$0xff] }
  0x1b   : > { %175 = vst [vmem:[%s763_s27 + $0x50] sm:$0xff] %v174_v10  ;;  %177 = vst [vmem:[%s763_s27 + $0x58] sm:$0xff] %v176_v11  ;;  %v180_v13 = vld [vmem:[%s758_s26 + $0xb8] sm:$0xff]  ;;  %v182_v14 = vld [vmem:[%s758_s26 + $0xc0] sm:$0xff] }
  0x1c   : > { %179 = vst [vmem:[%s763_s27 + $0x60] sm:$0xff] %v178_v12  ;;  %181 = vst [vmem:[%s763_s27 + $0x68] sm:$0xff] %v180_v13  ;;  %v184_v15 = vld [vmem:[%s758_s26 + $0xc8] sm:$0xff]  ;;  %v186_v16 = vld [vmem:[%s758_s26 + $0xd0] sm:$0xff] }
  0x1d   : > { %183 = vst [vmem:[%s763_s27 + $0x70] sm:$0xff] %v182_v14  ;;  %v188_v17 = vld [vmem:[%s758_s26 + $0xd8] sm:$0xff]  ;;  %185 = vst [vmem:[%s763_s27 + $0x78] sm:$0xff] %v184_v15  ;;  %v190_v18 = vld [vmem:[%s758_s26 + $0xe0] sm:$0xff] }
  0x1e   : > { %187 = vst [vmem:[%s763_s27 + $0x80] sm:$0xff] %v186_v16  ;;  %189 = vst [vmem:[%s763_s27 + $0x88] sm:$0xff] %v188_v17  ;;  %v192_v19 = vld [vmem:[%s758_s26 + $0xe8] sm:$0xff] }
  0x1f   : > { %191 = vst [vmem:[%s763_s27 + $0x90] sm:$0xff] %v190_v18  ;;  %193 = vst [vmem:[%s763_s27 + $0x98] sm:$0xff] %v192_v19 }
  0x20 PF: > { %p598_p7 = scmp.ge.s32.totalorder %s693_s14, 1  ;;  %p212_p8 = scmp.lt.s32.totalorder %s693_s14, 3 }
  0x22   : > { %p213_p9 = pnand %p598_p7, %p212_p8 }
  0x23   : > { %s219_s28 = sand.u32 (!%p213_p9), 1, %s685_s12   ;;  %p249_p10 = scmp.lt.s32.totalorder (!%p213_p9), %s733_s15, 1  ;;  %v695_v20 = vmov (!%p213_p9), 0.0   ;;  %v696_v21 = vmov (!%p213_p9), 0   ;;  %vm278_vm0 = vcmask (!%p213_p9), 1043456   ;;  %vm274_vm1 = vcmask (!%p213_p9), 293888  }
  0x24   : > { %216 = sbr.rel (%p213_p9) target bundleno = 283 (0x11b), region = 51  ;;  %349 = vmatprep.mubr.f32.mxu0 (!%p213_p9), %v695_v20  ;;  %448 = vmatprep.mubr.f32.mxu1 (!%p213_p9), %v695_v20  ;;  %s599_s14 = sshll.u32 (!%p213_p9), %s219_s28, 4 }
  0x25   : > { %s643_s29 = smul.u32 (!%p213_p9), 160, %s219_s28  ;;  %670 = vset.pattern.permute.xlu0 (!%p213_p9), %v696_v21  ;;  %s248_s17 = scalar_lea.vmem (!%p213_p9), [#allocation3], %s599_s14 }
  0x27   : > { %s811_s4 = scalar_lea.vmem (!%p213_p9), [#allocation2], %s643_s29 }
  0x28   : > { %v260_v22 = vld [vmem:[%s811_s4 + $0x8] sm:$0xff] (!%p213_p9)  ;;  %v262_v23 = vld [vmem:[%s811_s4 + $0x18] sm:$0xff] (!%p213_p9)  ;;  %v259_v27 = vld [vmem:[%s811_s4] sm:$0xff] (!%p213_p9) }
  0x29   : > { %v606_v24 = vld [vmem:[%s811_s4 + $0x58] sm:$0xff] (!%p213_p9)  ;;  %v625_v25 = vpack.c.bf16 (!%p213_p9), %v262_v23, %v260_v22  ;;  %v608_v26 = vld [vmem:[%s811_s4 + $0x68] sm:$0xff] (!%p213_p9)  ;;  %v261_v28 = vld [vmem:[%s811_s4 + $0x10] sm:$0xff] (!%p213_p9) }
  0x2a   : > { %v633_v29 = vpack.c.bf16 (!%p213_p9), %v608_v26, %v606_v24  ;;  %v627_v30 = vpack.c.bf16 (!%p213_p9), %v261_v28, %v259_v27  ;;  %v605_v31 = vld [vmem:[%s811_s4 + $0x50] sm:$0xff] (!%p213_p9)  ;;  %v607_v32 = vld [vmem:[%s811_s4 + $0x60] sm:$0xff] (!%p213_p9)  ;;  %v264_v33 = vld [vmem:[%s811_s4 + $0x28] sm:$0xff] (!%p213_p9) }
  0x2b   : > { %s809_s30 = scalar_select %p249_p10, %s733_s15, 1  ;;  %626 = vmatprep.subr.bf16.mxu0 %v625_v25  ;;  %v635_v34 = vpack.c.bf16 %v607_v32, %v605_v31  ;;  %v266_v35 = vld [vmem:[%s811_s4 + $0x38] sm:$0xff]  ;;  %v612_v37 = vld [vmem:[%s811_s4 + $0x88] sm:$0xff]  ;;  %v263_v40 = vld [vmem:[%s811_s4 + $0x20] sm:$0xff] }
  0x2c   : > { %v610_v36 = vld [vmem:[%s811_s4 + $0x78] sm:$0xff]  ;;  %634 = vmatprep.subr.bf16.mxu1 %v633_v29  ;;  %628 = vmatpush1.bf16.msra.mxu0 %v627_v30  ;;  %v629_v38 = vpack.c.bf16 %v266_v35, %v264_v33  ;;  %v265_v41 = vld [vmem:[%s811_s4 + $0x30] sm:$0xff]  ;;  %v611_v44 = vld [vmem:[%s811_s4 + $0x80] sm:$0xff]  ;;  %s624_s12 = sshll.u32 (%p748_p5), %s733_s15, 3 }
  0x2d   : > { %s600_s5 = sshll.u32 %s809_s30, 2  ;;  %v637_v39 = vpack.c.bf16 %v612_v37, %v610_v36  ;;  %v609_v42 = vld [vmem:[%s811_s4 + $0x70] sm:$0xff]  ;;  %636 = vmatpush1.bf16.msra.mxu1 %v635_v34  ;;  %v631_v43 = vpack.c.bf16 %v265_v41, %v263_v40  ;;  %v268_v46 = vld [vmem:[%s811_s4 + $0x48] sm:$0xf]  ;;  %v614_v47 = vld [vmem:[%s811_s4 + $0x98] sm:$0xf]  ;;  %s476_s22 = scalar_lea.vmem (%p748_p5), %s861_s3, %s624_s12 }
  0x2e   : > { %s256_s8 = scalar_lea.vmem %s860_s2, %s600_s5  ;;  %630 = vmatprep.subr.bf16.mxu0 %v629_v38  ;;  %v639_v45 = vpack.c.bf16 %v611_v44, %v609_v42  ;;  %s252_s11 = scalar_lea.vmem %s859_s1, %s600_s5  ;;  %v267_v49 = vld [vmem:[%s811_s4 + $0x40] sm:$0xf]  ;;  %v613_v50 = vld [vmem:[%s811_s4 + $0x90] sm:$0xf] }
  0x2f   : > { %638 = vmatprep.subr.bf16.mxu1 %v637_v39  ;;  %v258_v48 = vld [vmem:[%s256_s8] sm:$0xf] }
  0x30   : > { %632 = vmatpush1.bf16.msra.mxu0 %v631_v43  ;;  %271 = vperm.xlu0 %670, %v258_v48   ;;  %v257_v51 = vld [vmem:[%s252_s11] sm:$0xf] }
  0x31   : > { %640 = vmatpush1.bf16.msra.mxu1 %v639_v45  ;;  %602 = vmatprep.subr.msk.mxu0 %vm278_vm0, %v268_v46 }
  0x32   : > { %615 = vmatprep.subr.msk.mxu1 %vm278_vm0, %v614_v47 }
  0x34   : > { %603 = vmatpush1.msk.msra.mxu0 %vm278_vm0, %v267_v49 }
  0x35   : > { %616 = vmatpush1.msk.msra.mxu1 %vm278_vm0, %v613_v50  ;;  %604 = vmatmul.mubr.msk.f32.vlgmr.msra.gmra.mrb[0].mxu0 %vm274_vm1, %v257_v51 }
  0x36   : > { %617 = vmatmul.mubr.msk.f32.vlgmr.msra.gmra.mrb[0].mxu1 %vm274_vm1, %v257_v51 }
  0xaf   : > { %v272_v52 = vpop.permute.xlu0 %271 }
 0x108   : > { %v351_v53 = vpop.f32.mrb[0].mxu0 }
 0x109   : > { %v352_v54 = vadd.f32 %v351_v53, %v272_v52  ;;  %v450_v55 = vpop.f32.mrb[0].mxu1  ;;  %v353_v56 = vpop.f32.mrb[1].mxu0 }
 0x10a   : > { %v451_v57 = vadd.f32 %v450_v55, %v272_v52  ;;  %v354_v58 = vadd.f32 %v353_v56, %v272_v52  ;;  %v452_v59 = vpop.f32.mrb[1].mxu1 }
 0x10b   : > { %vm356_vm2 = vcmp.ge.f32.partialorder %v352_v54, 0.0  ;;  %v358_v60 = vmul.f32 0.01, %v352_v54  ;;  %v453_v61 = vadd.f32 %v452_v59, %v272_v52 }
 0x10c   : > { %vm455_vm3 = vcmp.ge.f32.partialorder %v451_v57, 0.0  ;;  %v457_v62 = vmul.f32 0.01, %v451_v57  ;;  %vm357_vm4 = vcmp.ge.f32.partialorder %v354_v58, 0.0  ;;  %v359_v63 = vmul.f32 0.01, %v354_v58 }
 0x10d   : > { %v360_v0 = vsel %vm356_vm2, %v352_v54, %v358_v60  ;;  %vm456_vm5 = vcmp.ge.f32.partialorder %v453_v61, 0.0  ;;  %v458_v1 = vmul.f32 0.01, %v453_v61  ;;  %473 = sbr.rel (!%p748_p5) target bundleno = 283 (0x11b), region = 59 }
 0x10e   : > { %v459_v2 = vsel %vm455_vm3, %v451_v57, %v457_v62  ;;  %v361_v3 = vsel %vm357_vm4, %v354_v58, %v359_v63 }
 0x10f   : > { %v364_v4 = vcombine.low %v360_v0, %v361_v3  ;;  %v460_v5 = vsel %vm456_vm5, %v453_v61, %v458_v1 }
 0x110   : > { %v463_v6 = vcombine.low %v459_v2, %v460_v5 }
 0x111   : > { %366 = vst [vmem:[%s248_s17] sm:$0xff] %v364_v4 }
 0x112   : > { %618 = vst [vmem:[%s248_s17 + $0x8] sm:$0xff] %v463_v6 }
 0x118   : > { %v506_v7 = vld [vmem:[%s248_s17] sm:$0xff] }
 0x119   : > { %v508_v8 = vld [vmem:[%s248_s17 + $0x8] sm:$0xff]  ;;  %507 = vst [vmem:[%s476_s22] sm:$0xff] %v506_v7 }
 0x11a   : > { %509 = vst [vmem:[%s476_s22 + $0x10] sm:$0xff] %v508_v8 }
 0x11b PF: > { %p10_p11 = scmp.ge.s32.totalorder %s736_s16, 4   ;;  %s863_s12 = smov %s689_s13 }
 0x11c   : > { %s864_s13 = smov %s746_s19  ;;  %s865_s14 = smov %s736_s16 }
 0x11d   :  { %12 = sbr.rel (!%p10_p11) target bundleno = 2 (0x2), region = 136 }

</bundles_post_ra>
